<compile_context>
chip_gen: v5e
topology: v5e:2x2
jax: 0.10.0
libtpu: 0.0.40
codegen_flags: <defaults>
</compile_context>

<pallas_src>
import functools
import math

import jax
import jax.numpy as jnp
from jax.experimental import pallas as pl
from jax.experimental.pallas import tpu as pltpu

# Logical (PyTorch) feature sizes.
D_IN, D_H1, D_H2, D_H3, D_OUT = 200, 150, 120, 100, 70
# 128-lane padded feature sizes used for the MXU tiles.
P_IN, P_H1, P_H2, P_H3, P_OUT = 256, 256, 128, 128, 128
# Column offsets of each layer inside the packed weight / bias arrays.
_OFFS = (0, P_H1, P_H1 + P_H2, P_H1 + P_H2 + P_H3, P_H1 + P_H2 + P_H3 + P_OUT)
PACKED_COLS = _OFFS[-1]   # 640
PACKED_ROWS = P_IN        # 256 (largest padded in-dim; unused rows are zero)


def _round_up(n, m):
    return ((n + m - 1) // m) * m


def _pad_to(a, shape):
    return jnp.pad(a, [(0, s - d) for d, s in zip(a.shape, shape)])


def ffn_kernel(x_ref, w_ref, b_ref, o_ref, xp_ref):
    """One batch tile: cast/pad x, then 4x (MXU matmul -> +bias f32 -> ReLU).

    x_ref : (tb, 200) f32    raw input rows
    w_ref : (256, 640) bf16  packed, zero-padded weights (VMEM-resident)
    b_ref : (1, 640)  f32    packed, zero-padded biases  (VMEM-resident)
    o_ref : (tb, 70)  f32    output rows
    xp_ref: (tb, 256) bf16   scratch: lane-padded bf16 copy of x
    """
    cdt = xp_ref.dtype  # compute dtype for the MXU operands (bf16)

    # In-kernel cast + lane pad 200 -> 256.  Padded lanes are written as exact
    # zeros (and the matching weight rows are zero too), so the pad is inert.
    xp_ref[:, D_IN:] = jnp.zeros((xp_ref.shape[0], PACKED_ROWS - D_IN), cdt)
    xp_ref[:, :D_IN] = x_ref[...].astype(cdt)
    x = xp_ref[...]                                   # (tb, 256) bf16

    # Layer 1: (tb, 256) @ (256, 256)
    h = jnp.dot(x, w_ref[:, _OFFS[0]:_OFFS[1]],
                preferred_element_type=jnp.float32)
    h = jnp.maximum(h + b_ref[:, _OFFS[0]:_OFFS[1]], 0.0).astype(cdt)

    # Layer 2: (tb, 256) @ (256, 128)
    h = jnp.dot(h, w_ref[:, _OFFS[1]:_OFFS[2]],
                preferred_element_type=jnp.float32)
    h = jnp.maximum(h + b_ref[:, _OFFS[1]:_OFFS[2]], 0.0).astype(cdt)

    # Layer 3: (tb, 128) @ (128, 128)  (static ref slices -> zero cost)
    h = jnp.dot(h, w_ref[0:P_H2, _OFFS[2]:_OFFS[3]],
                preferred_element_type=jnp.float32)
    h = jnp.maximum(h + b_ref[:, _OFFS[2]:_OFFS[3]], 0.0).astype(cdt)

    # Layer 4: (tb, 128) @ (128, 128)
    h = jnp.dot(h, w_ref[0:P_H3, _OFFS[3]:_OFFS[4]],
                preferred_element_type=jnp.float32)
    h = jnp.maximum(h + b_ref[:, _OFFS[3]:_OFFS[4]], 0.0)

    # Only the first 70 lanes are meaningful (padded weight cols are zero).
    o_ref[...] = h[:, :D_OUT].astype(o_ref.dtype)


def pack_params(params, compute_dtype=jnp.bfloat16):
    """Pad every W/b to 128-aligned shapes and pack into 2 contiguous arrays.

    Padded rows/cols and padded bias lanes are exactly zero, so padded lanes
    stay zero through the whole ReLU chain.  (In a real deployment call this
    once and reuse the packed arrays; it is cheap — ~230 KB of weights.)
    """
    (w1, b1), (w2, b2), (w3, b3), (w4, b4) = params
    w_packed = jnp.concatenate([
        _pad_to(w1, (PACKED_ROWS, P_H1)),
        _pad_to(w2, (PACKED_ROWS, P_H2)),
        _pad_to(w3, (PACKED_ROWS, P_H3)),
        _pad_to(w4, (PACKED_ROWS, P_OUT)),
    ], axis=1).astype(compute_dtype)
    b_packed = jnp.concatenate([
        _pad_to(b1.reshape(1, -1), (1, P_H1)),
        _pad_to(b2.reshape(1, -1), (1, P_H2)),
        _pad_to(b3.reshape(1, -1), (1, P_H3)),
        _pad_to(b4.reshape(1, -1), (1, P_OUT)),
    ], axis=1).astype(jnp.float32)
    return w_packed, b_packed


def _choose_batch_tile(batch, tile_b):
    """Balanced batch tile: multiple of 16, <= tile_b, last tile nearly full,
    and >=2 tiles when batch is large enough to keep both v7x cores busy."""
    n_tiles = max(1, math.ceil(batch / tile_b))
    if batch >= 512:                      # enough rows for 2 useful tiles
        n_tiles = max(n_tiles, 2)         # feed both v7x TensorCores
    tb = _round_up(max(math.ceil(batch / n_tiles), 16), 16)
    return tb


@functools.partial(jax.jit, static_argnames=("tile_b", "compute_dtype"))
def feed_forward_network(x, params, *, tile_b=2048, compute_dtype=jnp.bfloat16):
    """x: (B, 200) float32. params: list of (W, b) with W (in, out), b (out,)."""
    B = x.shape[0]
    w_packed, b_packed = pack_params(params, compute_dtype)

    tb = _choose_batch_tile(B, tile_b)
    grid = (pl.cdiv(B, tb),)   # last block may overhang; Pallas masks writes

    return pl.pallas_call(
        ffn_kernel,
        out_shape=jax.ShapeDtypeStruct((B, D_OUT), jnp.float32),
        grid_spec=pltpu.PrefetchScalarGridSpec(
            num_scalar_prefetch=0,
            grid=grid,
            in_specs=[
                # Raw f32 input rows; full (non-128) last dim is legal because
                # it equals the array's last dim.  Cast/pad happens in-kernel.
                pl.BlockSpec((tb, D_IN), lambda i: (i, 0)),
                # Constant index maps: weights/biases DMA'd once, stay resident.
                pl.BlockSpec((PACKED_ROWS, PACKED_COLS), lambda i: (0, 0)),
                pl.BlockSpec((1, PACKED_COLS), lambda i: (0, 0)),
            ],
            # True (B, 70) output: no wrapper slice, minimal writeback.
            out_specs=pl.BlockSpec((tb, D_OUT), lambda i: (i, 0)),
            scratch_shapes=[pltpu.VMEM((tb, PACKED_ROWS), compute_dtype)],
        ),
        compiler_params=pltpu.CompilerParams(
            dimension_semantics=("parallel",),      # shard batch across v7x TCs
            vmem_limit_bytes=48 * 1024 * 1024,      # room for tb=2048 on v5e too
        ),
    )(x, w_packed, b_packed)


def init_linear_params(key, in_features, out_features):
    """Deterministic init mimicking PyTorch nn.Linear default U[-1/sqrt(fan_in), +]."""
    kw, kb = jax.random.split(key)
    bound = 1.0 / jnp.sqrt(jnp.float32(in_features))
    # Stored as (in, out) so the kernel does x @ W (== PyTorch x @ W_t.T).
    w = jax.random.uniform(kw, (in_features, out_features), jnp.float32,
                           minval=-bound, maxval=bound)
    b = jax.random.uniform(kb, (out_features,), jnp.float32,
                           minval=-bound, maxval=bound)
    return w, b


if __name__ == "__main__":
    key = jax.random.PRNGKey(0)
    k_x, k1, k2, k3, k4 = jax.random.split(key, 5)

    B = 8
    x = jax.random.normal(k_x, (B, D_IN), jnp.float32)

    params = [
        init_linear_params(k1, D_IN, D_H1),
        init_linear_params(k2, D_H1, D_H2),
        init_linear_params(k3, D_H2, D_H3),
        init_linear_params(k4, D_H3, D_OUT),
    ]

    out = feed_forward_network(x, params)
    out = jax.block_until_ready(out)
    assert out.shape == (B, D_OUT), out.shape

    # Pure-JAX reference with the same mixed precision as the kernel
    # (bf16 operands, f32 accumulation + f32 bias/ReLU epilogue).
    ref = x
    for w, b in params:
        ref = jnp.dot(ref.astype(jnp.bfloat16), w.astype(jnp.bfloat16),
                      preferred_element_type=jnp.float32)
        ref = jnp.maximum(ref + b, 0.0)
    assert jnp.allclose(out, ref, atol=1e-2, rtol=1e-2), \
        float(jnp.max(jnp.abs(out - ref)))

    # Loose sanity check against full-f32 math (catches structural bugs).
    ref32 = x
    for w, b in params:
        ref32 = jnp.maximum(ref32 @ w + b, 0.0)
    assert jnp.allclose(out, ref32, atol=1e-1, rtol=1e-1)

    print("KERNEL_OK")
</pallas_src>

<mosaic_0001>
module attributes {stable_mosaic.version = 11 : i64} {
  func.func @ffn_kernel(%arg0: i32, %arg1: memref<16x200xf32, #tpu.memory_space<vmem>>, %arg2: memref<256x640xbf16, #tpu.memory_space<vmem>>, %arg3: memref<1x640xf32, #tpu.memory_space<vmem>>, %arg4: memref<16x70xf32, #tpu.memory_space<vmem>>, %arg5: memref<16x256xbf16, #tpu.memory_space<vmem>>) attributes {dimension_semantics = [#tpu.dimension_semantics<parallel>], iteration_bounds = array<i64: 1>, scalar_prefetch = 0 : i64, scratch_operands = 1 : i64, tpu.core_type = #tpu.core_type<tc>, window_params = [{transform_indices = @transform_0, window_bounds = array<i64: 16, 200>}, {pipeline_mode = #tpu.pipeline_mode<synchronous>, transform_indices = @transform_1, window_bounds = array<i64: 256, 640>}, {pipeline_mode = #tpu.pipeline_mode<synchronous>, transform_indices = @transform_2, window_bounds = array<i64: 1, 640>}, {transform_indices = @transform_3, window_bounds = array<i64: 16, 70>}]} {
    %cst = arith.constant 0.000000e+00 : bf16
    %0 = vector.broadcast %cst : bf16 to vector<16x56xbf16>
    %c0 = arith.constant 0 : index
    %c200 = arith.constant 200 : index
    %1 = vector.load %arg5[%c0, %c200] : memref<16x256xbf16, #tpu.memory_space<vmem>>, vector<16x56xbf16>
    tpu.vector_store %arg5[%c0, %c200], %0 {strides = array<i32>} : memref<16x256xbf16, #tpu.memory_space<vmem>>, vector<16x56xbf16>,
    %c0_0 = arith.constant 0 : index
    %c0_1 = arith.constant 0 : index
    %2 = vector.load %arg1[%c0_0, %c0_1] : memref<16x200xf32, #tpu.memory_space<vmem>>, vector<16x200xf32>
    %3 = arith.truncf %2 : vector<16x200xf32> to vector<16x200xbf16>
    %c0_2 = arith.constant 0 : index
    %c0_3 = arith.constant 0 : index
    %4 = vector.load %arg5[%c0_2, %c0_3] : memref<16x256xbf16, #tpu.memory_space<vmem>>, vector<16x200xbf16>
    tpu.vector_store %arg5[%c0_2, %c0_3], %3 {strides = array<i32>} : memref<16x256xbf16, #tpu.memory_space<vmem>>, vector<16x200xbf16>,
    %c0_4 = arith.constant 0 : index
    %c0_5 = arith.constant 0 : index
    %5 = vector.load %arg5[%c0_4, %c0_5] : memref<16x256xbf16, #tpu.memory_space<vmem>>, vector<16x256xbf16>
    %c0_6 = arith.constant 0 : index
    %c0_7 = arith.constant 0 : index
    %6 = vector.load %arg2[%c0_6, %c0_7] : memref<256x640xbf16, #tpu.memory_space<vmem>>, vector<256x256xbf16>
    %cst_8 = arith.constant dense<0.000000e+00> : vector<16x256xf32>
    %7 = tpu.matmul %5, %6, %cst_8 {dimension_numbers = #tpu.dot_dimension_numbers<[1], [0], [0], [1], [0, 0, 1, 1], [], []>} : vector<16x256xbf16>, vector<256x256xbf16>, vector<16x256xf32> -> vector<16x256xf32>
    %c0_9 = arith.constant 0 : index
    %c0_10 = arith.constant 0 : index
    %8 = vector.load %arg3[%c0_9, %c0_10] : memref<1x640xf32, #tpu.memory_space<vmem>>, vector<1x256xf32>
    %9 = vector.broadcast %8 : vector<1x256xf32> to vector<16x256xf32>
    %10 = arith.addf %7, %9 : vector<16x256xf32>
    %cst_11 = arith.constant 0.000000e+00 : f32
    %11 = vector.broadcast %cst_11 : f32 to vector<16x256xf32>
    %12 = arith.maximumf %10, %11 : vector<16x256xf32>
    %13 = arith.truncf %12 : vector<16x256xf32> to vector<16x256xbf16>
    %c0_12 = arith.constant 0 : index
    %c256 = arith.constant 256 : index
    %14 = vector.load %arg2[%c0_12, %c256] : memref<256x640xbf16, #tpu.memory_space<vmem>>, vector<256x128xbf16>
    %cst_13 = arith.constant dense<0.000000e+00> : vector<16x128xf32>
    %15 = tpu.matmul %13, %14, %cst_13 {dimension_numbers = #tpu.dot_dimension_numbers<[1], [0], [0], [1], [0, 0, 1, 1], [], []>} : vector<16x256xbf16>, vector<256x128xbf16>, vector<16x128xf32> -> vector<16x128xf32>
    %c0_14 = arith.constant 0 : index
    %c256_15 = arith.constant 256 : index
    %16 = vector.load %arg3[%c0_14, %c256_15] : memref<1x640xf32, #tpu.memory_space<vmem>>, vector<1x128xf32>
    %17 = vector.broadcast %16 : vector<1x128xf32> to vector<16x128xf32>
    %18 = arith.addf %15, %17 : vector<16x128xf32>
    %cst_16 = arith.constant 0.000000e+00 : f32
    %19 = vector.broadcast %cst_16 : f32 to vector<16x128xf32>
    %20 = arith.maximumf %18, %19 : vector<16x128xf32>
    %21 = arith.truncf %20 : vector<16x128xf32> to vector<16x128xbf16>
    %c0_17 = arith.constant 0 : index
    %c384 = arith.constant 384 : index
    %22 = vector.load %arg2[%c0_17, %c384] : memref<256x640xbf16, #tpu.memory_space<vmem>>, vector<128x128xbf16>
    %cst_18 = arith.constant dense<0.000000e+00> : vector<16x128xf32>
    %23 = tpu.matmul %21, %22, %cst_18 {dimension_numbers = #tpu.dot_dimension_numbers<[1], [0], [0], [1], [0, 0, 1, 1], [], []>} : vector<16x128xbf16>, vector<128x128xbf16>, vector<16x128xf32> -> vector<16x128xf32>
    %c0_19 = arith.constant 0 : index
    %c384_20 = arith.constant 384 : index
    %24 = vector.load %arg3[%c0_19, %c384_20] : memref<1x640xf32, #tpu.memory_space<vmem>>, vector<1x128xf32>
    %25 = vector.broadcast %24 : vector<1x128xf32> to vector<16x128xf32>
    %26 = arith.addf %23, %25 : vector<16x128xf32>
    %cst_21 = arith.constant 0.000000e+00 : f32
    %27 = vector.broadcast %cst_21 : f32 to vector<16x128xf32>
    %28 = arith.maximumf %26, %27 : vector<16x128xf32>
    %29 = arith.truncf %28 : vector<16x128xf32> to vector<16x128xbf16>
    %c0_22 = arith.constant 0 : index
    %c512 = arith.constant 512 : index
    %30 = vector.load %arg2[%c0_22, %c512] : memref<256x640xbf16, #tpu.memory_space<vmem>>, vector<128x128xbf16>
    %cst_23 = arith.constant dense<0.000000e+00> : vector<16x128xf32>
    %31 = tpu.matmul %29, %30, %cst_23 {dimension_numbers = #tpu.dot_dimension_numbers<[1], [0], [0], [1], [0, 0, 1, 1], [], []>} : vector<16x128xbf16>, vector<128x128xbf16>, vector<16x128xf32> -> vector<16x128xf32>
    %c0_24 = arith.constant 0 : index
    %c512_25 = arith.constant 512 : index
    %32 = vector.load %arg3[%c0_24, %c512_25] : memref<1x640xf32, #tpu.memory_space<vmem>>, vector<1x128xf32>
    %33 = vector.broadcast %32 : vector<1x128xf32> to vector<16x128xf32>
    %34 = arith.addf %31, %33 : vector<16x128xf32>
    %cst_26 = arith.constant 0.000000e+00 : f32
    %35 = vector.broadcast %cst_26 : f32 to vector<16x128xf32>
    %36 = arith.maximumf %34, %35 : vector<16x128xf32>
    %37 = vector.extract_strided_slice %36 {offsets = [0, 0], sizes = [16, 70], strides = [1, 1]} : vector<16x128xf32> to vector<16x70xf32>
    %c0_27 = arith.constant 0 : index
    %c0_28 = arith.constant 0 : index
    %38 = vector.load %arg4[%c0_27, %c0_28] : memref<16x70xf32, #tpu.memory_space<vmem>>, vector<16x70xf32>
    tpu.vector_store %arg4[%c0_27, %c0_28], %37 {strides = array<i32>} : memref<16x70xf32, #tpu.memory_space<vmem>>, vector<16x70xf32>,
    return
  }
  func.func @transform_0(%arg0: i32) -> (i32, i32) {
    %c0_i32 = arith.constant 0 : i32
    %c0_i32_0 = arith.constant 0 : i32
    return %arg0, %c0_i32 : i32, i32
  }
  func.func @transform_1(%arg0: i32) -> (i32, i32) {
    %c0_i32 = arith.constant 0 : i32
    %c0_i32_0 = arith.constant 0 : i32
    %c0_i32_1 = arith.constant 0 : i32
    return %c0_i32, %c0_i32_0 : i32, i32
  }
  func.func @transform_2(%arg0: i32) -> (i32, i32) {
    %c0_i32 = arith.constant 0 : i32
    %c0_i32_0 = arith.constant 0 : i32
    %c0_i32_1 = arith.constant 0 : i32
    return %c0_i32, %c0_i32_0 : i32, i32
  }
  func.func @transform_3(%arg0: i32) -> (i32, i32) {
    %c0_i32 = arith.constant 0 : i32
    %c0_i32_0 = arith.constant 0 : i32
    return %arg0, %c0_i32 : i32, i32
  }
}

</mosaic_0001>

<bundles_post_ra>
// kernel: feed_forward_network.1
= control target key start
LH: loop header
LB: loop body
LE: loop exit
PB: predicated region body
PF: predicated region fallthrough
CT: control target
= control target key end

     0   :  { %8 = vsyncpa [#allocation4], 0  ;;  %vm16_vm0 = vcmask 1044032   ;;  %vm25_vm1 = vcmask 1043456   ;;  %vm26_vm2 = vcmask 588804   ;;  %vm634_vm4 = vcmask 572416   ;;  %s1453_s0 = inlined_call_operand.vmem [shape: f32[8,200], index: 0, kind: input, shape index: {}]   ;;  %s1454_s1 = inlined_call_operand.vmem [shape: bf16[256,640], index: 1, kind: input, shape index: {}]   ;;  %s1455_s2 = inlined_call_operand.vmem [shape: f32[1,640], index: 2, kind: input, shape index: {}]   ;;  %s1456_s3 = inlined_call_operand.hbm [shape: f32[8,70], index: 3, kind: output, shape index: {}]  }
   0x1   :  { %v721_v0 = vld [vmem:[%s1454_s1 + $0x118] sm:$0xf]  ;;  %v936_v1 = vld [vmem:[%s1454_s1 + $0x128] sm:$0xf0]  ;;  %v935_v5 = vld [vmem:[%s1454_s1 + $0x11c] sm:$0xf] }
   0x2   :  { %v722_v2 = vor.u32 %v936_v1, %v721_v0  ;;  %v785_v3 = vld [vmem:[%s1454_s1 + $0x258] sm:$0xf]  ;;  %v952_v4 = vld [vmem:[%s1454_s1 + $0x268] sm:$0xf0]  ;;  %v723_v7 = vld [vmem:[%s1454_s1 + $0x12c] sm:$0xf0] }
   0x3   :  { %v786_v6 = vor.u32 %v952_v4, %v785_v3  ;;  %v951_v8 = vld [vmem:[%s1454_s1 + $0x25c] sm:$0xf]  ;;  %v787_v9 = vld [vmem:[%s1454_s1 + $0x26c] sm:$0xf0]  ;;  %v726_v10 = vor.u32 %v935_v5, %v723_v7  ;;  %v934_v13 = vld [vmem:[%s1454_s1 + $0x100] sm:$0xf0] }
   0x4   :  { %240 = vmatpush.bf16.msra.mxu0 %v722_v2  ;;  %v790_v11 = vor.u32 %v951_v8, %v787_v9  ;;  %v713_v12 = vld [vmem:[%s1454_s1 + $0xf0] sm:$0xf]  ;;  %v950_v16 = vld [vmem:[%s1454_s1 + $0x240] sm:$0xf0]  ;;  %v933_v17 = vld [vmem:[%s1454_s1 + $0xf4] sm:$0xf] }
   0x5   :  { %v777_v14 = vld [vmem:[%s1454_s1 + $0x230] sm:$0xf]  ;;  %254 = vmatpush.bf16.msra.mxu1 %v786_v6  ;;  %v714_v15 = vor.u32 %v934_v13, %v713_v12  ;;  %v715_v18 = vld [vmem:[%s1454_s1 + $0x104] sm:$0xf0]  ;;  %268 = vmatpush.bf16.msra.mxu2 %v726_v10  ;;  %v949_v21 = vld [vmem:[%s1454_s1 + $0x234] sm:$0xf] }
   0x6   :  { %282 = vmatpush.bf16.msra.mxu3 %v790_v11  ;;  %v778_v19 = vor.u32 %v950_v16, %v777_v14  ;;  %v718_v20 = vor.u32 %v933_v17, %v715_v18  ;;  %v779_v22 = vld [vmem:[%s1454_s1 + $0x244] sm:$0xf0]  ;;  %v932_v25 = vld [vmem:[%s1454_s1 + $0xd8] sm:$0xf0]  ;;  %v931_v29 = vld [vmem:[%s1454_s1 + $0xcc] sm:$0xf] }
   0x7   :  { %v705_v23 = vld [vmem:[%s1454_s1 + $0xc8] sm:$0xf]  ;;  %v782_v24 = vor.u32 %v949_v21, %v779_v22  ;;  %v948_v27 = vld [vmem:[%s1454_s1 + $0x218] sm:$0xf0]  ;;  %v707_v30 = vld [vmem:[%s1454_s1 + $0xdc] sm:$0xf0] }
   0x8   :  { %v769_v26 = vld [vmem:[%s1454_s1 + $0x208] sm:$0xf]  ;;  %241 = vmatpush.bf16.msra.mxu0 %v714_v15  ;;  %v706_v28 = vor.u32 %v932_v25, %v705_v23  ;;  %v947_v31 = vld [vmem:[%s1454_s1 + $0x20c] sm:$0xf]  ;;  %v771_v33 = vld [vmem:[%s1454_s1 + $0x21c] sm:$0xf0]  ;;  %v710_v36 = vor.u32 %v931_v29, %v707_v30 }
   0x9   :  { %255 = vmatpush.bf16.msra.mxu1 %v778_v19  ;;  %v770_v32 = vor.u32 %v948_v27, %v769_v26  ;;  %v697_v34 = vld [vmem:[%s1454_s1 + $0xa0] sm:$0xf]  ;;  %v930_v35 = vld [vmem:[%s1454_s1 + $0xb0] sm:$0xf0]  ;;  %269 = vmatpush.bf16.msra.mxu2 %v718_v20  ;;  %v774_v37 = vor.u32 %v947_v31, %v771_v33  ;;  %v929_v40 = vld [vmem:[%s1454_s1 + $0xa4] sm:$0xf] }
   0xa   :  { %283 = vmatpush.bf16.msra.mxu3 %v782_v24  ;;  %v761_v38 = vld [vmem:[%s1454_s1 + $0x1e0] sm:$0xf]  ;;  %v946_v39 = vld [vmem:[%s1454_s1 + $0x1f0] sm:$0xf0]  ;;  %v699_v41 = vld [vmem:[%s1454_s1 + $0xb4] sm:$0xf0]  ;;  %v698_v44 = vor.u32 %v930_v35, %v697_v34 }
   0xb   :  { %v945_v42 = vld [vmem:[%s1454_s1 + $0x1e4] sm:$0xf]  ;;  %v763_v43 = vld [vmem:[%s1454_s1 + $0x1f4] sm:$0xf0]  ;;  %v762_v45 = vor.u32 %v946_v39, %v761_v38  ;;  %v928_v47 = vld [vmem:[%s1454_s1 + $0x88] sm:$0xf0]  ;;  %v702_v48 = vor.u32 %v929_v40, %v699_v41 }
   0xc   :  { %242 = vmatpush.bf16.msra.mxu0 %v706_v28  ;;  %v689_v46 = vld [vmem:[%s1454_s1 + $0x78] sm:$0xf]  ;;  %v766_v49 = vor.u32 %v945_v42, %v763_v43  ;;  %v944_v51 = vld [vmem:[%s1454_s1 + $0x1c8] sm:$0xf0]  ;;  %v927_v52 = vld [vmem:[%s1454_s1 + $0x7c] sm:$0xf] }
   0xd   :  { %256 = vmatpush.bf16.msra.mxu1 %v770_v32  ;;  %270 = vmatpush.bf16.msra.mxu2 %v710_v36  ;;  %v753_v50 = vld [vmem:[%s1454_s1 + $0x1b8] sm:$0xf]  ;;  %v691_v53 = vld [vmem:[%s1454_s1 + $0x8c] sm:$0xf0]  ;;  %v943_v54 = vld [vmem:[%s1454_s1 + $0x1bc] sm:$0xf]  ;;  %v690_v56 = vor.u32 %v928_v47, %v689_v46 }
   0xe   :  { %284 = vmatpush.bf16.msra.mxu3 %v774_v37  ;;  %v755_v55 = vld [vmem:[%s1454_s1 + $0x1cc] sm:$0xf0]  ;;  %v754_v57 = vor.u32 %v944_v51, %v753_v50  ;;  %v926_v59 = vld [vmem:[%s1454_s1 + $0x60] sm:$0xf0]  ;;  %v694_v60 = vor.u32 %v927_v52, %v691_v53  ;;  %v925_v0 = vld [vmem:[%s1454_s1 + $0x54] sm:$0xf] }
   0xf   :  { %v681_v58 = vld [vmem:[%s1454_s1 + $0x50] sm:$0xf]  ;;  %v758_v61 = vor.u32 %v943_v54, %v755_v55  ;;  %v942_v63 = vld [vmem:[%s1454_s1 + $0x1a0] sm:$0xf0]  ;;  %v683_v1 = vld [vmem:[%s1454_s1 + $0x64] sm:$0xf0] }
  0x10   :  { %243 = vmatpush.bf16.msra.mxu0 %v698_v44  ;;  %v745_v62 = vld [vmem:[%s1454_s1 + $0x190] sm:$0xf]  ;;  %v941_v2 = vld [vmem:[%s1454_s1 + $0x194] sm:$0xf]  ;;  %v747_v3 = vld [vmem:[%s1454_s1 + $0x1a4] sm:$0xf0]  ;;  %v682_v4 = vor.u32 %v926_v59, %v681_v58  ;;  %v686_v12 = vor.u32 %v925_v0, %v683_v1 }
  0x11   :  { %257 = vmatpush.bf16.msra.mxu1 %v762_v45  ;;  %271 = vmatpush.bf16.msra.mxu2 %v702_v48  ;;  %v673_v5 = vld [vmem:[%s1454_s1 + $0x28] sm:$0xf]  ;;  %v924_v6 = vld [vmem:[%s1454_s1 + $0x38] sm:$0xf0]  ;;  %v746_v8 = vor.u32 %v942_v63, %v745_v62  ;;  %v923_v10 = vld [vmem:[%s1454_s1 + $0x2c] sm:$0xf]  ;;  %v750_v13 = vor.u32 %v941_v2, %v747_v3 }
  0x12   :  { %285 = vmatpush.bf16.msra.mxu3 %v766_v49  ;;  %v737_v7 = vld [vmem:[%s1454_s1 + $0x168] sm:$0xf]  ;;  %v940_v9 = vld [vmem:[%s1454_s1 + $0x178] sm:$0xf0]  ;;  %v675_v11 = vld [vmem:[%s1454_s1 + $0x3c] sm:$0xf0]  ;;  %v674_v22 = vor.u32 %v924_v6, %v673_v5 }
  0x13   :  { %v939_v14 = vld [vmem:[%s1454_s1 + $0x16c] sm:$0xf]  ;;  %v739_v15 = vld [vmem:[%s1454_s1 + $0x17c] sm:$0xf0]  ;;  %v922_v17 = vld [vmem:[%s1454_s1 + $0x10] sm:$0xf0]  ;;  %v738_v27 = vor.u32 %v940_v9, %v737_v7  ;;  %v678_v31 = vor.u32 %v923_v10, %v675_v11 }
  0x14   :  { %244 = vmatpush.bf16.msra.mxu0 %v690_v56  ;;  %v665_v16 = vld [vmem:[%s1454_s1] sm:$0xf]  ;;  %v1018_v18 = vmov 0   ;;  %v20_v20 = vld [vmem:[%s1453_s0 + $0x8] sm:$0xff]  ;;  %v21_v21 = vld [vmem:[%s1453_s0 + $0x10] sm:$0xff]  ;;  %v742_v32 = vor.u32 %v939_v14, %v739_v15 }
  0x15   :  { %258 = vmatpush.bf16.msra.mxu1 %v754_v57  ;;  %272 = vmatpush.bf16.msra.mxu2 %v694_v60  ;;  %17 = vst.msk [vmem:[#allocation2 + $0x4] sm:$0xf] %vm16_vm0, %v1018_v18  ;;  %v19_v19 = vld [vmem:[%s1453_s0] sm:$0xff]  ;;  %v938_v24 = vld [vmem:[%s1454_s1 + $0x150] sm:$0xf0]  ;;  %v22_v25 = vld [vmem:[%s1453_s0 + $0x18] sm:$0xff]  ;;  %v666_v37 = vor.u32 %v922_v17, %v665_v16 }
  0x16   :  { %286 = vmatpush.bf16.msra.mxu3 %v758_v61  ;;  %v729_v23 = vld [vmem:[%s1454_s1 + $0x140] sm:$0xf]  ;;  %18 = vst.msk [vmem:[#allocation2 + $0xc] sm:$0xf] %vm16_vm0, %v1018_v18  ;;  %v23_v26 = vpack.c.bf16 %v20_v20, %v19_v19  ;;  %v921_v28 = vld [vmem:[%s1454_s1 + $0x4] sm:$0xf]  ;;  %v24_v30 = vpack.c.bf16 %v22_v25, %v21_v21  ;;  %vm27_vm3 = vmor %vm26_vm2, %vm25_vm1 }
  0x17   :  { %v667_v29 = vld [vmem:[%s1454_s1 + $0x14] sm:$0xf0]  ;;  %v821_v33 = vld [vmem:[%s1454_s1 + $0x120] sm:$0xf]  ;;  %v960_v34 = vld [vmem:[%s1454_s1 + $0x130] sm:$0xf0]  ;;  %v730_v40 = vor.u32 %v938_v24, %v729_v23 }
  0x18   :  { %245 = vmatpush.bf16.msra.mxu0 %v682_v4  ;;  %28 = vst.msk [vmem:[#allocation2] sm:$0xff] %vm27_vm3, %v23_v26  ;;  %v937_v35 = vld [vmem:[%s1454_s1 + $0x144] sm:$0xf]  ;;  %v731_v36 = vld [vmem:[%s1454_s1 + $0x154] sm:$0xf0]  ;;  %v822_v41 = vor.u32 %v960_v34, %v821_v33  ;;  %v670_v42 = vor.u32 %v921_v28, %v667_v29 }
  0x19   :  { %259 = vmatpush.bf16.msra.mxu1 %v746_v8  ;;  %273 = vmatpush.bf16.msra.mxu2 %v686_v12  ;;  %29 = vst.msk [vmem:[#allocation2 + $0x8] sm:$0xff] %vm27_vm3, %v24_v30  ;;  %v853_v38 = vld [vmem:[%s1454_s1 + $0x260] sm:$0xf]  ;;  %v968_v39 = vld [vmem:[%s1454_s1 + $0x270] sm:$0xf0]  ;;  %v734_v43 = vor.u32 %v937_v35, %v731_v36 }
  0x1a   :  { %287 = vmatpush.bf16.msra.mxu3 %v750_v13  ;;  %v817_v44 = vld [vmem:[%s1454_s1 + $0xf8] sm:$0xf]  ;;  %v854_v45 = vor.u32 %v968_v39, %v853_v38  ;;  %v959_v46 = vld [vmem:[%s1454_s1 + $0x108] sm:$0xf0]  ;;  %v813_v57 = vld [vmem:[%s1454_s1 + $0xd0] sm:$0xf] }
  0x1b   :  { %v849_v47 = vld [vmem:[%s1454_s1 + $0x238] sm:$0xf]  ;;  %v967_v48 = vld [vmem:[%s1454_s1 + $0x248] sm:$0xf0]  ;;  %v818_v55 = vor.u32 %v959_v46, %v817_v44  ;;  %v958_v58 = vld [vmem:[%s1454_s1 + $0xe0] sm:$0xf0] }
  0x1c   :  { %246 = vmatpush.bf16.msra.mxu0 %v674_v22  ;;  %v850_v56 = vor.u32 %v967_v48, %v849_v47  ;;  %v814_v59 = vor.u32 %v958_v58, %v813_v57  ;;  %v809_v60 = vld [vmem:[%s1454_s1 + $0xa8] sm:$0xf]  ;;  %v957_v61 = vld [vmem:[%s1454_s1 + $0xb8] sm:$0xf0]  ;;  %v845_v63 = vld [vmem:[%s1454_s1 + $0x210] sm:$0xf] }
  0x1d   :  { %260 = vmatpush.bf16.msra.mxu1 %v738_v27  ;;  %274 = vmatpush.bf16.msra.mxu2 %v678_v31  ;;  %v810_v62 = vor.u32 %v957_v61, %v809_v60  ;;  %v966_v0 = vld [vmem:[%s1454_s1 + $0x220] sm:$0xf0]  ;;  %v805_v2 = vld [vmem:[%s1454_s1 + $0x80] sm:$0xf]  ;;  %v956_v3 = vld [vmem:[%s1454_s1 + $0x90] sm:$0xf0] }
  0x1e   :  { %288 = vmatpush.bf16.msra.mxu3 %v742_v32  ;;  %v846_v1 = vor.u32 %v966_v0, %v845_v63  ;;  %v806_v4 = vor.u32 %v956_v3, %v805_v2  ;;  %v841_v5 = vld [vmem:[%s1454_s1 + $0x1e8] sm:$0xf]  ;;  %v965_v6 = vld [vmem:[%s1454_s1 + $0x1f8] sm:$0xf0]  ;;  %v801_v8 = vld [vmem:[%s1454_s1 + $0x58] sm:$0xf] }
  0x1f   :  { %v657_v49 = vld [vmem:[#allocation2] sm:$0xf]  ;;  %v919_v50 = vld [vmem:[#allocation2 + $0x4] sm:$0xf]  ;;  %v842_v7 = vor.u32 %v965_v6, %v841_v5  ;;  %v955_v9 = vld [vmem:[%s1454_s1 + $0x68] sm:$0xf0] }
  0x20   :  { %247 = vmatpush.bf16.msra.mxu0 %v666_v37  ;;  %v920_v51 = vld [vmem:[#allocation2 + $0x4] sm:$0xf0]  ;;  %v659_v52 = vld [vmem:[#allocation2 + $0x8] sm:$0xf0]  ;;  %v802_v10 = vor.u32 %v955_v9, %v801_v8  ;;  %v837_v11 = vld [vmem:[%s1454_s1 + $0x1c0] sm:$0xf] }
  0x21   :  { %261 = vmatpush.bf16.msra.mxu1 %v730_v40  ;;  %275 = vmatpush.bf16.msra.mxu2 %v670_v42  ;;  %v658_v53 = vor.u32 %v920_v51, %v657_v49  ;;  %v662_v54 = vor.u32 %v919_v50, %v659_v52  ;;  %v964_v12 = vld [vmem:[%s1454_s1 + $0x1d0] sm:$0xf0]  ;;  %v797_v14 = vld [vmem:[%s1454_s1 + $0x30] sm:$0xf]  ;;  %v954_v15 = vld [vmem:[%s1454_s1 + $0x40] sm:$0xf0] }
  0x22   :  { %289 = vmatpush.bf16.msra.mxu3 %v734_v43  ;;  %v838_v13 = vor.u32 %v964_v12, %v837_v11  ;;  %v798_v16 = vor.u32 %v954_v15, %v797_v14  ;;  %v833_v17 = vld [vmem:[%s1454_s1 + $0x198] sm:$0xf]  ;;  %v963_v18 = vld [vmem:[%s1454_s1 + $0x1a8] sm:$0xf0]  ;;  %v793_v20 = vld [vmem:[%s1454_s1 + $0x8] sm:$0xf] }
  0x23   :  { %248 = vmatmul.bf16.vlgmr.msra.gmra.mxu0 %v658_v53  ;;  %v834_v19 = vor.u32 %v963_v18, %v833_v17  ;;  %v953_v21 = vld [vmem:[%s1454_s1 + $0x18] sm:$0xf0]  ;;  %v829_v23 = vld [vmem:[%s1454_s1 + $0x170] sm:$0xf]  ;;  %v962_v24 = vld [vmem:[%s1454_s1 + $0x180] sm:$0xf0] }
  0x24   :  { %434 = vmatpush.bf16.msrb.mxu0 %v822_v41  ;;  %262 = vmatmul.bf16.vlgmr.msra.gmra.mxu1 %v662_v54  ;;  %v794_v22 = vor.u32 %v953_v21, %v793_v20  ;;  %v830_v25 = vor.u32 %v962_v24, %v829_v23  ;;  %v825_v26 = vld [vmem:[%s1454_s1 + $0x148] sm:$0xf]  ;;  %v961_v27 = vld [vmem:[%s1454_s1 + $0x158] sm:$0xf0]  ;;  %v885_v29 = vld [vmem:[%s1454_s1 + $0x124] sm:$0xf] }
  0x25   :  { %448 = vmatpush.bf16.msrb.mxu1 %v854_v45  ;;  %276 = vmatmul.bf16.vlgmr.msra.gmra.mxu2 %v658_v53  ;;  %v826_v28 = vor.u32 %v961_v27, %v825_v26  ;;  %v976_v30 = vld [vmem:[%s1454_s1 + $0x134] sm:$0xf0]  ;;  %v881_v31 = vld [vmem:[%s1454_s1 + $0xfc] sm:$0xf]  ;;  %v975_v33 = vld [vmem:[%s1454_s1 + $0x10c] sm:$0xf0] }
  0x26   :  { %290 = vmatmul.bf16.vlgmr.msra.gmra.mxu3 %v662_v54  ;;  %v886_v32 = vor.u32 %v976_v30, %v885_v29  ;;  %v882_v34 = vor.u32 %v975_v33, %v881_v31  ;;  %v877_v35 = vld [vmem:[%s1454_s1 + $0xd4] sm:$0xf]  ;;  %v974_v36 = vld [vmem:[%s1454_s1 + $0xe4] sm:$0xf0]  ;;  %v64_v37 = vld [vmem:[%s1455_s2] sm:$0x3] }
  0x27   :  { %v878_v38 = vor.u32 %v974_v36, %v877_v35  ;;  %v66_v41 = vperm.slane %v64_v37, 0  ;;  %v67_v45 = vperm.slane %v64_v37, 1  ;;  %v873_v63 = vld [vmem:[%s1454_s1 + $0xac] sm:$0xf]  ;;  %v973_v0 = vld [vmem:[%s1454_s1 + $0xbc] sm:$0xf0] }
  0x28   :  { %435 = vmatpush.bf16.msrb.mxu0 %v818_v55  ;;  %533 = vmatpush.bf16.msrb.mxu2 %v886_v32  ;;  %v869_v2 = vld [vmem:[%s1454_s1 + $0x84] sm:$0xf]  ;;  %v972_v3 = vld [vmem:[%s1454_s1 + $0x94] sm:$0xf0]  ;;  %v865_v5 = vld [vmem:[%s1454_s1 + $0x5c] sm:$0xf] }
  0x29   :  { %449 = vmatpush.bf16.msrb.mxu1 %v850_v56  ;;  %v971_v6 = vld [vmem:[%s1454_s1 + $0x6c] sm:$0xf0]  ;;  %v861_v8 = vld [vmem:[%s1454_s1 + $0x34] sm:$0xf]  ;;  %v970_v9 = vld [vmem:[%s1454_s1 + $0x44] sm:$0xf0] }
  0x2a   :  { %v857_v11 = vld [vmem:[%s1454_s1 + $0xc] sm:$0xf]  ;;  %v969_v12 = vld [vmem:[%s1454_s1 + $0x1c] sm:$0xf0]  ;;  %v917_v14 = vld [vmem:[%s1454_s1 + $0x128] sm:$0xf] }
  0x2b   :  { %v984_v15 = vld [vmem:[%s1454_s1 + $0x138] sm:$0xf0]  ;;  %v983_v18 = vld [vmem:[%s1454_s1 + $0x110] sm:$0xf0]  ;;  %v909_v20 = vld [vmem:[%s1454_s1 + $0xd8] sm:$0xf] }
  0x2c   :  { %436 = vmatpush.bf16.msrb.mxu0 %v814_v59  ;;  %534 = vmatpush.bf16.msrb.mxu2 %v882_v34  ;;  %v918_v17 = vor.u32 %v984_v15, %v917_v14  ;;  %v982_v21 = vld [vmem:[%s1454_s1 + $0xe8] sm:$0xf0]  ;;  %v905_v23 = vld [vmem:[%s1454_s1 + $0xb0] sm:$0xf]  ;;  %v981_v24 = vld [vmem:[%s1454_s1 + $0xc0] sm:$0xf0] }
  0x2d   :  { %450 = vmatpush.bf16.msrb.mxu1 %v846_v1  ;;  %v874_v1 = vor.u32 %v973_v0, %v873_v63  ;;  %v906_v26 = vor.u32 %v981_v24, %v905_v23 }
  0x2e   :  { %618 = vmatpush.bf16.msrb.mxu3 %v918_v17 }
  0x30   :  { %437 = vmatpush.bf16.msrb.mxu0 %v810_v62  ;;  %535 = vmatpush.bf16.msrb.mxu2 %v878_v38  ;;  %v901_v38 = vld [vmem:[%s1454_s1 + $0x88] sm:$0xf] }
  0x31   :  { %451 = vmatpush.bf16.msrb.mxu1 %v842_v7  ;;  %v866_v7 = vor.u32 %v971_v6, %v865_v5 }
  0x34   :  { %438 = vmatpush.bf16.msrb.mxu0 %v806_v4  ;;  %536 = vmatpush.bf16.msrb.mxu2 %v874_v1  ;;  %v870_v4 = vor.u32 %v972_v3, %v869_v2 }
  0x35   :  { %452 = vmatpush.bf16.msrb.mxu1 %v838_v13  ;;  %v858_v13 = vor.u32 %v969_v12, %v857_v11 }
  0x38   :  { %439 = vmatpush.bf16.msrb.mxu0 %v802_v10  ;;  %537 = vmatpush.bf16.msrb.mxu2 %v870_v4  ;;  %v862_v10 = vor.u32 %v970_v9, %v861_v8 }
  0x39   :  { %453 = vmatpush.bf16.msrb.mxu1 %v834_v19 }
  0x3c   :  { %440 = vmatpush.bf16.msrb.mxu0 %v798_v16  ;;  %538 = vmatpush.bf16.msrb.mxu2 %v866_v7  ;;  %v913_v16 = vld [vmem:[%s1454_s1 + $0x100] sm:$0xf] }
  0x3d   :  { %454 = vmatpush.bf16.msrb.mxu1 %v830_v25  ;;  %v914_v19 = vor.u32 %v983_v18, %v913_v16 }
  0x3f   :  { %619 = vmatpush.bf16.msrb.mxu3 %v914_v19 }
  0x40   :  { %441 = vmatpush.bf16.msrb.mxu0 %v794_v22  ;;  %539 = vmatpush.bf16.msrb.mxu2 %v862_v10  ;;  %v910_v22 = vor.u32 %v982_v21, %v909_v20 }
  0x41   :  { %455 = vmatpush.bf16.msrb.mxu1 %v826_v28  ;;  %v989_v28 = vld [vmem:[%s1455_s2 + $0x2] ss:$0 sm:$0xff] }
  0x43   :  { %620 = vmatpush.bf16.msrb.mxu3 %v910_v22 }
  0x44   :  { %540 = vmatpush.bf16.msrb.mxu2 %v858_v13 }
  0x47   :  { %621 = vmatpush.bf16.msrb.mxu3 %v906_v26 }
  0xa0   :  { %v249_v39 = vpop.f32.mrf.mxu0 }
  0xa1   :  { %v263_v40 = vpop.f32.mrf.mxu1  ;;  %v250_v42 = vadd.f32 %v249_v39, %v66_v41  ;;  %v980_v39 = vld [vmem:[%s1454_s1 + $0x98] sm:$0xf0] }
  0xa3   :  { %v264_v47 = vadd.f32 %v263_v40, %v250_v42  ;;  %v902_v40 = vor.u32 %v980_v39, %v901_v38  ;;  %v979_v42 = vld [vmem:[%s1454_s1 + $0x70] sm:$0xf0] }
  0xa5   :  { %v296_v52 = vmax.f32 %v264_v47, 0.0  ;;  %622 = vmatpush.bf16.msrb.mxu3 %v902_v40  ;;  %v889_v47 = vld [vmem:[%s1454_s1 + $0x10] sm:$0xf] }
  0xa8   :  { %v277_v43 = vpop.f32.mrf.mxu2  ;;  %v251_v46 = vpop.f32.mrf.mxu0 }
  0xa9   :  { %v291_v44 = vpop.f32.mrf.mxu3  ;;  %v252_v48 = vadd.f32 %v251_v46, %v66_v41  ;;  %v265_v49 = vpop.f32.mrf.mxu1  ;;  %v278_v51 = vadd.f32 %v277_v43, %v67_v45  ;;  %v897_v41 = vld [vmem:[%s1454_s1 + $0x60] sm:$0xf] }
  0xaa   :  { %v898_v43 = vor.u32 %v979_v42, %v897_v41 }
  0xab   :  { %v266_v50 = vadd.f32 %v265_v49, %v252_v48  ;;  %v292_v56 = vadd.f32 %v291_v44, %v278_v51  ;;  %v893_v44 = vld [vmem:[%s1454_s1 + $0x38] sm:$0xf]  ;;  %v977_v48 = vld [vmem:[%s1454_s1 + $0x20] sm:$0xf0]  ;;  %v990_v51 = vld [vmem:[%s1455_s2 + $0x3] ss:$0 sm:$0xff] }
  0xac   :  { %623 = vmatpush.bf16.msrb.mxu3 %v898_v43  ;;  %v890_v49 = vor.u32 %v977_v48, %v889_v47 }
  0xad   :  { %v298_v53 = vmax.f32 %v266_v50, 0.0  ;;  %v297_v60 = vmax.f32 %v292_v56, 0.0 }
  0xaf   :  { %v300_v54 = vpack.c.bf16 %v298_v53, %v296_v52 }
  0xb0   :  { %v279_v55 = vpop.f32.mrf.mxu2 }
  0xb1   :  { %v280_v57 = vadd.f32 %v279_v55, %v67_v45  ;;  %v293_v58 = vpop.f32.mrf.mxu3  ;;  %442 = vmatmul.bf16.vlgmr.msrb.gmra.mxu0 %v300_v54  ;;  %v978_v45 = vld [vmem:[%s1454_s1 + $0x48] sm:$0xf0] }
  0xb2   :  { %v894_v46 = vor.u32 %v978_v45, %v893_v44 }
  0xb3   :  { %v294_v59 = vadd.f32 %v293_v58, %v280_v57  ;;  %v991_v58 = vld [vmem:[%s1455_s2 + $0x4] ss:$0 sm:$0xff] }
  0xb4   :  { %624 = vmatpush.bf16.msrb.mxu3 %v894_v46 }
  0xb5   :  { %v299_v61 = vmax.f32 %v294_v59, 0.0 }
  0xb7   :  { %v301_v62 = vpack.c.bf16 %v299_v61, %v297_v60 }
  0xb8   :  { %625 = vmatpush.bf16.msrb.mxu3 %v890_v49 }
  0xb9   :  { %456 = vmatmul.bf16.vlgmr.msrb.gmra.mxu1 %v301_v62 }
 0x12e   :  { %v443_v25 = vpop.f32.mrf.mxu0 }
 0x12f   :  { %v444_v30 = vadd.f32 %v989_v28, %v443_v25 }
 0x136   :  { %v457_v27 = vpop.f32.mrf.mxu1  ;;  %v445_v29 = vpop.f32.mrf.mxu0 }
 0x137   :  { %v458_v31 = vadd.f32 %v457_v27, %v444_v30  ;;  %v446_v32 = vadd.f32 %v989_v28, %v445_v29 }
 0x139   :  { %v462_v35 = vmax.f32 %v458_v31, 0.0 }
 0x13e   :  { %v459_v33 = vpop.f32.mrf.mxu1 }
 0x13f   :  { %v460_v34 = vadd.f32 %v459_v33, %v446_v32 }
 0x141   :  { %v463_v36 = vmax.f32 %v460_v34, 0.0 }
 0x143   :  { %v464_v37 = vpack.c.bf16 %v463_v36, %v462_v35 }
 0x145   :  { %541 = vmatmul.bf16.vlgmr.msrb.gmra.mxu2 %v464_v37 }
 0x1c8   :  { %v542_v50 = vpop.f32.mrf.mxu2 }
 0x1c9   :  { %v543_v52 = vadd.f32 %v990_v51, %v542_v50 }
 0x1cb   :  { %v547_v55 = vmax.f32 %v543_v52, 0.0 }
 0x1d0   :  { %v544_v53 = vpop.f32.mrf.mxu2 }
 0x1d1   :  { %v545_v54 = vadd.f32 %v990_v51, %v544_v53 }
 0x1d3   :  { %v548_v56 = vmax.f32 %v545_v54, 0.0 }
 0x1d5   :  { %v549_v57 = vpack.c.bf16 %v548_v56, %v547_v55 }
 0x1d7   :  { %626 = vmatmul.bf16.vlgmr.msrb.gmra.mxu3 %v549_v57 }
 0x25a   :  { %v627_v59 = vpop.f32.mrf.mxu3 }
 0x25b   :  { %v628_v60 = vadd.f32 %v991_v58, %v627_v59 }
 0x25d   :  { %v632_v61 = vmax.f32 %v628_v60, 0.0 }
 0x25f   :  { %635 = vst.msk [vmem:[#allocation3] sm:$0xff] %vm634_vm4, %v632_v61 }
 0x262   :  { %v629_v62 = vpop.f32.mrf.mxu3 }
 0x263   :  { %v630_v63 = vadd.f32 %v991_v58, %v629_v62 }
 0x265   :  { %v633_v0 = vmax.f32 %v630_v63, 0.0 }
 0x267   :  { %636 = vst.msk [vmem:[#allocation3 + $0x8] sm:$0xff] %vm634_vm4, %v633_v0 }
 0x268   :  { %640 = vsyncadd [#allocation4], 128  ;;  %s643_s9 = sshll.u32 %s1456_s3, 4  ;;  %s1019_s10 = smov [#allocation3]   ;;  %s644_s9 = int_to_ptr.hbm [resolvable:$true] %s643_s9 }
 0x269   :  { %s641_s11 = sshll.u32 %s1019_s10, 4  ;;  %s1020_s12 = smov 128   ;;  %s642_s11 = int_to_ptr.vmem [resolvable:$true] %s641_s11 }
 0x26a   :  { %s1021_s2 = smov 8  }
 0x26b   :  { %649 = dma.vmem_to_hbm [thread:$0]  %s642_s11, 128, %s644_s9, [#allocation4], %s1020_s12, %s1020_s12, %s1021_s2  }
 0x26c   :  { %1016 = dma.done.wait [#allocation4], 256  }
 0x26d   :  { %1017 = vsyncadd [#allocation4], 4294967040 }
 0x26e   :  { %654 = vsyncpa [#allocation4], 1 }

</bundles_post_ra>
